<compile_context>
chip_gen: v7x
topology: tpu7x:2x2x1
jax: 0.10.0
libtpu: 0.0.40
codegen_flags: <defaults>
</compile_context>

<pallas_src>
import jax
import jax.numpy as jnp
from jax.experimental import pallas as pl
from jax.experimental.pallas import tpu as pltpu

IN_FEATURES = 784
K_PAD = 896            # 7 * 128, lane-aligned contraction dim
HIDDEN = 256
OUT_FEATURES = 10
OUT_PAD = 128          # lane-dense output width


def _round_up(x, m):
    return (x + m - 1) // m * m


def mlp_kernel(x_ref, w1_ref, b1_ref, w2_ref, b2_ref, o_ref):
    # x_ref:  (TM, 896)   bf16
    # w1_ref: (896, 256)  bf16   (VMEM-resident across grid steps)
    # b1_ref: (1, 256)    f32
    # w2_ref: (256, 128)  bf16   (VMEM-resident)
    # b2_ref: (1, 128)    f32
    # o_ref:  (TM, 128)   f32
    h = jnp.dot(x_ref[...], w1_ref[...],
                preferred_element_type=jnp.float32) + b1_ref[...]
    h = jnp.maximum(h, 0.0)                                  # ReLU on VPU
    y = jnp.dot(h.astype(jnp.bfloat16), w2_ref[...],
                preferred_element_type=jnp.float32) + b2_ref[...]
    o_ref[...] = y


def net_forward(x, w1, b1, w2, b2, *, tm=512):
    """Pallas implementation of Net.forward.

    x: any shape whose trailing dims flatten to 784 (e.g. (B, 1, 28, 28)).
    w1: (784, 256), b1: (256,), w2: (256, 10), b2: (10,)  -- weights stored
    transposed relative to torch.nn.Linear so the kernel computes x @ W + b.
    Returns logits of shape (B, 10), float32.
    """
    x2d = x.reshape(-1, IN_FEATURES).astype(jnp.float32)     # view(-1, 784)
    B = x2d.shape[0]

    # Row tile: multiple of 8 (sublane), clamped for small batches.
    tm = min(tm, _round_up(B, 8))
    Bp = _round_up(B, tm)

    # Host-side padding / casts (done once per call, outside the kernel).
    xp = jnp.pad(x2d.astype(jnp.bfloat16),
                 ((0, Bp - B), (0, K_PAD - IN_FEATURES)))
    w1p = jnp.pad(w1.astype(jnp.bfloat16),
                  ((0, K_PAD - IN_FEATURES), (0, 0)))
    w2p = jnp.pad(w2.astype(jnp.bfloat16),
                  ((0, 0), (0, OUT_PAD - OUT_FEATURES)))
    b1p = b1.reshape(1, HIDDEN).astype(jnp.float32)
    b2p = jnp.pad(b2.reshape(1, OUT_FEATURES).astype(jnp.float32),
                  ((0, 0), (0, OUT_PAD - OUT_FEATURES)))

    grid = (Bp // tm,)

    cost = pl.CostEstimate(
        flops=2 * Bp * (K_PAD * HIDDEN + HIDDEN * OUT_PAD),
        transcendentals=0,
        bytes_accessed=(xp.size * 2 + w1p.size * 2 + w2p.size * 2
                        + b1p.size * 4 + b2p.size * 4 + Bp * OUT_PAD * 4),
    )

    out = pl.pallas_call(
        mlp_kernel,
        out_shape=jax.ShapeDtypeStruct((Bp, OUT_PAD), jnp.float32),
        grid_spec=pltpu.PrefetchScalarGridSpec(
            num_scalar_prefetch=0,
            grid=grid,
            in_specs=[
                pl.BlockSpec((tm, K_PAD), lambda i: (i, 0)),        # x tile
                pl.BlockSpec((K_PAD, HIDDEN), lambda i: (0, 0)),    # W1 resident
                pl.BlockSpec((1, HIDDEN), lambda i: (0, 0)),        # b1 resident
                pl.BlockSpec((HIDDEN, OUT_PAD), lambda i: (0, 0)),  # W2 resident
                pl.BlockSpec((1, OUT_PAD), lambda i: (0, 0)),       # b2 resident
            ],
            out_specs=pl.BlockSpec((tm, OUT_PAD), lambda i: (i, 0)),
        ),
        compiler_params=pltpu.CompilerParams(
            dimension_semantics=("parallel",),   # shard batch tiles across TCs
            vmem_limit_bytes=64 << 20,
        ),
        cost_estimate=cost,
    )(xp, w1p, b1p, w2p, b2p)

    return out[:B, :OUT_FEATURES]


def init_params(key):
    """Deterministic init matching torch.nn.Linear default (uniform ±1/sqrt(fan_in)),
    stored as (in_features, out_features)."""
    k1, k2, k3, k4 = jax.random.split(key, 4)
    bound1 = 1.0 / jnp.sqrt(IN_FEATURES)
    bound2 = 1.0 / jnp.sqrt(HIDDEN)
    w1 = jax.random.uniform(k1, (IN_FEATURES, HIDDEN), jnp.float32, -bound1, bound1)
    b1 = jax.random.uniform(k2, (HIDDEN,), jnp.float32, -bound1, bound1)
    w2 = jax.random.uniform(k3, (HIDDEN, OUT_FEATURES), jnp.float32, -bound2, bound2)
    b2 = jax.random.uniform(k4, (OUT_FEATURES,), jnp.float32, -bound2, bound2)
    return w1, b1, w2, b2


if __name__ == "__main__":
    key = jax.random.PRNGKey(0)
    kx, kp = jax.random.split(key)

    # Small MNIST-shaped batch: (B, C, H, W) = (8, 1, 28, 28) -> flattens to 784.
    x = jax.random.normal(kx, (8, 1, 28, 28), dtype=jnp.float32)
    w1, b1, w2, b2 = init_params(kp)

    logits = net_forward(x, w1, b1, w2, b2)
    jax.block_until_ready(logits)

    # Reference in plain f32 JAX; bf16 matmul inputs => loose tolerance.
    x2d = x.reshape(-1, IN_FEATURES)
    ref = jnp.maximum(x2d @ w1 + b1, 0.0) @ w2 + b2
    assert logits.shape == (8, OUT_FEATURES)
    assert jnp.allclose(logits, ref, atol=3e-2, rtol=3e-2)

    print("KERNEL_OK")
</pallas_src>

<mosaic_0001>
module attributes {stable_mosaic.version = 11 : i64} {
  func.func @mlp_kernel(%arg0: i32, %arg1: memref<8x896xbf16, #tpu.memory_space<vmem>>, %arg2: memref<896x256xbf16, #tpu.memory_space<vmem>>, %arg3: memref<1x256xf32, #tpu.memory_space<vmem>>, %arg4: memref<256x128xbf16, #tpu.memory_space<vmem>>, %arg5: memref<1x128xf32, #tpu.memory_space<vmem>>, %arg6: memref<8x128xf32, #tpu.memory_space<vmem>>) attributes {dimension_semantics = [#tpu.dimension_semantics<parallel>], iteration_bounds = array<i64: 1>, scalar_prefetch = 0 : i64, scratch_operands = 0 : i64, tpu.core_type = #tpu.core_type<tc>, window_params = [{transform_indices = @transform_0, window_bounds = array<i64: 8, 896>}, {pipeline_mode = #tpu.pipeline_mode<synchronous>, transform_indices = @transform_1, window_bounds = array<i64: 896, 256>}, {pipeline_mode = #tpu.pipeline_mode<synchronous>, transform_indices = @transform_2, window_bounds = array<i64: 1, 256>}, {pipeline_mode = #tpu.pipeline_mode<synchronous>, transform_indices = @transform_3, window_bounds = array<i64: 256, 128>}, {pipeline_mode = #tpu.pipeline_mode<synchronous>, transform_indices = @transform_4, window_bounds = array<i64: 1, 128>}, {transform_indices = @transform_5, window_bounds = array<i64: 8, 128>}]} {
    %c0 = arith.constant 0 : index
    %c0_0 = arith.constant 0 : index
    %0 = vector.load %arg1[%c0, %c0_0] : memref<8x896xbf16, #tpu.memory_space<vmem>>, vector<8x896xbf16>
    %c0_1 = arith.constant 0 : index
    %c0_2 = arith.constant 0 : index
    %1 = vector.load %arg2[%c0_1, %c0_2] : memref<896x256xbf16, #tpu.memory_space<vmem>>, vector<896x256xbf16>
    %cst = arith.constant dense<0.000000e+00> : vector<8x256xf32>
    %2 = tpu.matmul %0, %1, %cst {dimension_numbers = #tpu.dot_dimension_numbers<[1], [0], [0], [1], [0, 0, 1, 1], [], []>} : vector<8x896xbf16>, vector<896x256xbf16>, vector<8x256xf32> -> vector<8x256xf32>
    %c0_3 = arith.constant 0 : index
    %c0_4 = arith.constant 0 : index
    %3 = vector.load %arg3[%c0_3, %c0_4] : memref<1x256xf32, #tpu.memory_space<vmem>>, vector<1x256xf32>
    %4 = vector.broadcast %3 : vector<1x256xf32> to vector<8x256xf32>
    %5 = arith.addf %2, %4 : vector<8x256xf32>
    %cst_5 = arith.constant 0.000000e+00 : f32
    %6 = vector.broadcast %cst_5 : f32 to vector<8x256xf32>
    %7 = arith.maximumf %5, %6 : vector<8x256xf32>
    %8 = arith.truncf %7 : vector<8x256xf32> to vector<8x256xbf16>
    %c0_6 = arith.constant 0 : index
    %c0_7 = arith.constant 0 : index
    %9 = vector.load %arg4[%c0_6, %c0_7] : memref<256x128xbf16, #tpu.memory_space<vmem>>, vector<256x128xbf16>
    %cst_8 = arith.constant dense<0.000000e+00> : vector<8x128xf32>
    %10 = tpu.matmul %8, %9, %cst_8 {dimension_numbers = #tpu.dot_dimension_numbers<[1], [0], [0], [1], [0, 0, 1, 1], [], []>} : vector<8x256xbf16>, vector<256x128xbf16>, vector<8x128xf32> -> vector<8x128xf32>
    %c0_9 = arith.constant 0 : index
    %c0_10 = arith.constant 0 : index
    %11 = vector.load %arg5[%c0_9, %c0_10] : memref<1x128xf32, #tpu.memory_space<vmem>>, vector<1x128xf32>
    %12 = vector.broadcast %11 : vector<1x128xf32> to vector<8x128xf32>
    %13 = arith.addf %10, %12 : vector<8x128xf32>
    %c0_11 = arith.constant 0 : index
    %c0_12 = arith.constant 0 : index
    %14 = vector.load %arg6[%c0_11, %c0_12] : memref<8x128xf32, #tpu.memory_space<vmem>>, vector<8x128xf32>
    tpu.vector_store %arg6[%c0_11, %c0_12], %13 {strides = array<i32>} : memref<8x128xf32, #tpu.memory_space<vmem>>, vector<8x128xf32>,
    return
  }
  func.func @transform_0(%arg0: i32) -> (i32, i32) {
    %c0_i32 = arith.constant 0 : i32
    %c0_i32_0 = arith.constant 0 : i32
    return %arg0, %c0_i32 : i32, i32
  }
  func.func @transform_1(%arg0: i32) -> (i32, i32) {
    %c0_i32 = arith.constant 0 : i32
    %c0_i32_0 = arith.constant 0 : i32
    %c0_i32_1 = arith.constant 0 : i32
    return %c0_i32, %c0_i32_0 : i32, i32
  }
  func.func @transform_2(%arg0: i32) -> (i32, i32) {
    %c0_i32 = arith.constant 0 : i32
    %c0_i32_0 = arith.constant 0 : i32
    %c0_i32_1 = arith.constant 0 : i32
    return %c0_i32, %c0_i32_0 : i32, i32
  }
  func.func @transform_3(%arg0: i32) -> (i32, i32) {
    %c0_i32 = arith.constant 0 : i32
    %c0_i32_0 = arith.constant 0 : i32
    %c0_i32_1 = arith.constant 0 : i32
    return %c0_i32, %c0_i32_0 : i32, i32
  }
  func.func @transform_4(%arg0: i32) -> (i32, i32) {
    %c0_i32 = arith.constant 0 : i32
    %c0_i32_0 = arith.constant 0 : i32
    %c0_i32_1 = arith.constant 0 : i32
    return %c0_i32, %c0_i32_0 : i32, i32
  }
  func.func @transform_5(%arg0: i32) -> (i32, i32) {
    %c0_i32 = arith.constant 0 : i32
    %c0_i32_0 = arith.constant 0 : i32
    return %arg0, %c0_i32 : i32, i32
  }
}

</mosaic_0001>

<bundles_post_ra>
// kernel: tpu_custom_call.1
= control target key start
LH: loop header
LB: loop body
LE: loop exit
PB: predicated region body
PF: predicated region fallthrough
CT: control target
= control target key end

     0   :  { %10 = vsyncpa [#allocation3], 0  ;;  %s1793_s0 = inlined_call_operand.hbm [shape: bf16[8,896], index: 0, kind: input, shape index: {}]   ;;  %s1794_s1 = inlined_call_operand.hbm [shape: bf16[896,256], index: 1, kind: input, shape index: {}]   ;;  %s1795_s2 = inlined_call_operand.hbm [shape: f32[1,256], index: 2, kind: input, shape index: {}]   ;;  %s1796_s3 = inlined_call_operand.hbm [shape: bf16[256,128], index: 3, kind: input, shape index: {}]   ;;  %s1797_s4 = inlined_call_operand.hbm [shape: f32[1,128], index: 4, kind: input, shape index: {}]   ;;  %s1798_s5 = inlined_call_operand.hbm [shape: f32[8,128], index: 5, kind: output, shape index: {}]  }
   0x1   :  { %11 = vsyncpa [#allocation6], 0 }
   0x2   :  { %12 = vsyncpa [#allocation9], 0 }
   0x3   :  { %13 = vsyncpa [#allocation4], 0  ;;  %s1668_s18 = smov [#allocation5]   ;;  %s1528_s22 = scalar_lea.hbm %s1794_s1, 14336 }
   0x4   :  { %s29_s19 = sshll.u32 %s1668_s18, 4  ;;  %p1529_p0 = scmp.ne.s32.totalorder %s1794_s1, %s1528_s22  ;;  %s30_s19 = int_to_ptr.vmem [resolvable:$true] %s29_s19 }
   0x5   :  { %p1532_p1 = scmp.lt.u32.totalorder %s1528_s22, %s1794_s1 }
   0x7   :  { %p1534_p2 = pnand %p1532_p1, %p1529_p0 }
   0x9   :  { %1537 = shalt.err (!%p1534_p2)
}
   0xa   :  { %s1538_s27 = scalar_lea.vmem %s30_s19, 14336  ;;  %p1543_p4 = scmp.lt.s32.totalorder %s30_s19, %s30_s19 }
   0xb   :  { %p1539_p3 = scmp.ne.s32.totalorder %s30_s19, %s1538_s27  ;;  %p1544_p5 = scmp.lt.s32.totalorder %s1538_s27, %s1538_s27 }
   0xd   :  { %p1545_p6 = por %p1544_p5, %p1543_p4 }
   0xf   :  { %p1546_p7 = pnand %p1545_p6, %p1539_p3 }
  0x11   :  { %1549 = shalt.err (!%p1546_p7)
}
  0x12   :  { %s1669_s28 = smov 128   ;;  %s1670_s29 = smov 8  }
  0x13   :  { %35 = dma.hbm_to_vmem [thread:$0]  %s1794_s1, 14336, %s30_s19, [#allocation6], %s1669_s28, %s1669_s28, %s1670_s29  }
  0x14   :  { %s1671_s7 = smov [#allocation8]   ;;  %s1550_s11 = scalar_lea.hbm %s1796_s3, 2048 }
  0x15   :  { %s51_s8 = sshll.u32 %s1671_s7, 4  ;;  %p1551_p8 = scmp.ne.s32.totalorder %s1796_s3, %s1550_s11  ;;  %s52_s8 = int_to_ptr.vmem [resolvable:$true] %s51_s8 }
  0x16   :  { %p1554_p9 = scmp.lt.u32.totalorder %s1550_s11, %s1796_s3 }
  0x18   :  { %p1556_p10 = pnand %p1554_p9, %p1551_p8 }
  0x1a   :  { %1559 = shalt.err (!%p1556_p10)
}
  0x1b   :  { %s1560_s16 = scalar_lea.vmem %s52_s8, 2048  ;;  %p1565_p12 = scmp.lt.s32.totalorder %s52_s8, %s52_s8 }
  0x1c   :  { %p1561_p11 = scmp.ne.s32.totalorder %s52_s8, %s1560_s16  ;;  %p1566_p13 = scmp.lt.s32.totalorder %s1560_s16, %s1560_s16 }
  0x1e   :  { %p1567_p0 = por %p1566_p13, %p1565_p12 }
  0x20   :  { %p1568_p1 = pnand %p1567_p0, %p1561_p11 }
  0x22   :  { %1571 = shalt.err (!%p1568_p1)
}
  0x23   :  { %s1672_s1 = smov 64   ;;  %s1673_s17 = smov 4  }
  0x24   :  { %57 = dma.hbm_to_vmem [thread:$0]  %s1796_s3, 2048, %s52_s8, [#allocation9], %s1672_s1, %s1672_s1, %s1673_s17  }
  0x25   :  { %s1674_s20 = smov [#allocation2]   ;;  %s1675_s22 = smov [#allocation7]  }
  0x26   :  { %s20_s21 = sshll.u32 %s1674_s20, 4  ;;  %s42_s23 = sshll.u32 %s1675_s22, 4  ;;  %s21_s21 = int_to_ptr.vmem [resolvable:$true] %s20_s21  ;;  %s43_s23 = int_to_ptr.vmem [resolvable:$true] %s42_s23 }
  0x27   :  { %s1572_s26 = scalar_lea.hbm %s1793_s0, 448 }
  0x28   :  { %p1573_p2 = scmp.ne.s32.totalorder %s1793_s0, %s1572_s26  ;;  %p1576_p3 = scmp.lt.u32.totalorder %s1572_s26, %s1793_s0 }
  0x2a   :  { %p1578_p4 = pnand %p1576_p3, %p1573_p2 }
  0x2c   :  { %1581 = shalt.err (!%p1578_p4)
}
  0x2d   :  { %s1582_s3 = scalar_lea.vmem %s21_s21, 448  ;;  %p1587_p6 = scmp.lt.s32.totalorder %s21_s21, %s21_s21 }
  0x2e   :  { %p1583_p5 = scmp.ne.s32.totalorder %s21_s21, %s1582_s3  ;;  %p1588_p7 = scmp.lt.s32.totalorder %s1582_s3, %s1582_s3 }
  0x30   :  { %p1589_p8 = por %p1588_p7, %p1587_p6 }
  0x32   :  { %p1590_p9 = pnand %p1589_p8, %p1583_p5 }
  0x34   :  { %1593 = shalt.err (!%p1590_p9)
}
  0x35   :  { %23 = dma.hbm_to_vmem [thread:$0]  %s1793_s0, 448, %s21_s21, [#allocation3]  }
  0x36   :  { %s1594_s10 = scalar_lea.hbm %s1795_s2, 32 }
  0x37   :  { %p1595_p10 = scmp.ne.s32.totalorder %s1795_s2, %s1594_s10  ;;  %p1598_p11 = scmp.lt.u32.totalorder %s1594_s10, %s1795_s2 }
  0x39   :  { %p1600_p12 = pnand %p1598_p11, %p1595_p10 }
  0x3b   :  { %1603 = shalt.err (!%p1600_p12)
}
  0x3c   :  { %s1604_s15 = scalar_lea.vmem %s43_s23, 32  ;;  %p1609_p0 = scmp.lt.s32.totalorder %s43_s23, %s43_s23 }
  0x3d   :  { %p1605_p13 = scmp.ne.s32.totalorder %s43_s23, %s1604_s15  ;;  %p1610_p1 = scmp.lt.s32.totalorder %s1604_s15, %s1604_s15 }
  0x3f   :  { %p1611_p2 = por %p1610_p1, %p1609_p0 }
  0x41   :  { %p1612_p3 = pnand %p1611_p2, %p1605_p13 }
  0x43   :  { %1615 = shalt.err (!%p1612_p3)
}
  0x44   :  { %45 = dma.hbm_to_vmem [thread:$0]  %s1795_s2, 32, %s43_s23, [#allocation6]  }
  0x45   :  { %s1676_s1 = smov [#allocation10]   ;;  %s1616_s20 = scalar_lea.hbm %s1797_s4, 16 }
  0x46   :  { %s64_s17 = sshll.u32 %s1676_s1, 4  ;;  %p1617_p4 = scmp.ne.s32.totalorder %s1797_s4, %s1616_s20  ;;  %s65_s17 = int_to_ptr.vmem [resolvable:$true] %s64_s17 }
  0x47   :  { %p1620_p5 = scmp.lt.u32.totalorder %s1616_s20, %s1797_s4 }
  0x49   :  { %p1622_p6 = pnand %p1620_p5, %p1617_p4 }
  0x4b   :  { %1625 = shalt.err (!%p1622_p6)
}
  0x4c   :  { %s1626_s26 = scalar_lea.vmem %s65_s17, 16  ;;  %s1630_s2 = scalar_lea.vmem %s65_s17, 32 }
  0x4d   :  { %p1627_p7 = scmp.ne.s32.totalorder %s65_s17, %s1626_s26  ;;  %p1631_p8 = scmp.lt.s32.totalorder %s65_s17, %s65_s17 }
  0x4e   :  { %p1632_p9 = scmp.lt.s32.totalorder %s1630_s2, %s1626_s26 }
  0x50   :  { %p1633_p10 = por %p1632_p9, %p1631_p8 }
  0x52   :  { %p1634_p11 = pnand %p1633_p10, %p1627_p7 }
  0x54   :  { %1637 = shalt.err (!%p1634_p11)
}
  0x55   :  { %67 = dma.hbm_to_vmem [thread:$0]  %s1797_s4, 16, %s65_s17, [#allocation9]  }
  0x56   :  { %1660 = dma.done.wait [#allocation3], 448  }
  0x57   :  { %1661 = vsyncadd [#allocation3], 4294966848 }
  0x58   :  { %1662 = dma.done.wait [#allocation6], 14368  }
  0x59   :  { %1663 = vsyncadd [#allocation6], 4294952928 }
  0x5a   :  { %1664 = dma.done.wait [#allocation9], 2064  }
  0x5b   :  { %1665 = vsyncadd [#allocation9], 4294965232  ;;  %v1337_v0 = vld [vmem:[#allocation5 + $0x104] ss:$8 sps:$4 sm:$0xff]   ;;  %v1339_v1 = vld [vmem:[#allocation5 + $0x100] ss:$8 sps:$4 sm:$0xff]  }
  0x5c   :  { %838 = vmatprep.subr.bf16.mxu0 %v1337_v0  ;;  %v1340_v2 = vld [vmem:[#allocation5 + $0x114] ss:$8 sps:$4 sm:$0xff]   ;;  %v1342_v3 = vld [vmem:[#allocation5 + $0x110] ss:$8 sps:$4 sm:$0xff]   ;;  %v1343_v4 = vld [vmem:[#allocation5 + $0x124] ss:$8 sps:$4 sm:$0xff]  }
  0x5d   :  { %839 = vmatpush1.bf16.msra.mxu0 %v1339_v1  ;;  %v1345_v5 = vld [vmem:[#allocation5 + $0x120] ss:$8 sps:$4 sm:$0xff]   ;;  %v1346_v6 = vld [vmem:[#allocation5 + $0x134] ss:$8 sps:$4 sm:$0xff]   ;;  %v1348_v7 = vld [vmem:[#allocation5 + $0x130] ss:$8 sps:$4 sm:$0xff]  }
  0x5e   :  { %840 = vmatprep.subr.bf16.mxu0 %v1340_v2  ;;  %v1361_v8 = vld [vmem:[#allocation5 + $0x4] ss:$8 sps:$4 sm:$0xff]   ;;  %v1363_v9 = vld [vmem:[#allocation5] ss:$8 sps:$4 sm:$0xff]   ;;  %v1367_v11 = vld [vmem:[#allocation5 + $0x14] ss:$8 sps:$4 sm:$0xff]  }
  0x5f   :  { %v1349_v10 = vld [vmem:[#allocation5 + $0x144] ss:$8 sps:$4 sm:$0xff]   ;;  %797 = vmatprep.subr.bf16.mxu1 %v1361_v8  ;;  %v1369_v12 = vld [vmem:[#allocation5 + $0x10] ss:$8 sps:$4 sm:$0xff]   ;;  %v1351_v13 = vld [vmem:[#allocation5 + $0x140] ss:$8 sps:$4 sm:$0xff]  }
  0x60   :  { %798 = vmatpush1.bf16.msra.mxu1 %v1363_v9  ;;  %v1352_v14 = vld [vmem:[#allocation5 + $0x154] ss:$8 sps:$4 sm:$0xff]   ;;  %v1373_v15 = vld [vmem:[#allocation5 + $0x24] ss:$8 sps:$4 sm:$0xff]   ;;  %v1375_v16 = vld [vmem:[#allocation5 + $0x20] ss:$8 sps:$4 sm:$0xff]  }
  0x61   :  { %841 = vmatpush1.bf16.msra.mxu0 %v1342_v3  ;;  %799 = vmatprep.subr.bf16.mxu1 %v1367_v11  ;;  %v1354_v17 = vld [vmem:[#allocation5 + $0x150] ss:$8 sps:$4 sm:$0xff]   ;;  %v1379_v18 = vld [vmem:[#allocation5 + $0x34] ss:$8 sps:$4 sm:$0xff]   ;;  %v1355_v19 = vld [vmem:[#allocation5 + $0x164] ss:$8 sps:$4 sm:$0xff]  }
  0x62   :  { %842 = vmatprep.subr.bf16.mxu0 %v1343_v4  ;;  %v1381_v20 = vld [vmem:[#allocation5 + $0x30] ss:$8 sps:$4 sm:$0xff]   ;;  %v1357_v21 = vld [vmem:[#allocation5 + $0x160] ss:$8 sps:$4 sm:$0xff]   ;;  %v1385_v22 = vld [vmem:[#allocation5 + $0x44] ss:$8 sps:$4 sm:$0xff]  }
  0x63   :  { %v1358_v23 = vld [vmem:[#allocation5 + $0x174] ss:$8 sps:$4 sm:$0xff]   ;;  %v1387_v24 = vld [vmem:[#allocation5 + $0x40] ss:$8 sps:$4 sm:$0xff]   ;;  %v1360_v25 = vld [vmem:[#allocation5 + $0x170] ss:$8 sps:$4 sm:$0xff]  }
  0x64   :  { %800 = vmatpush1.bf16.msra.mxu1 %v1369_v12  ;;  %v1391_v26 = vld [vmem:[#allocation5 + $0x54] ss:$8 sps:$4 sm:$0xff]   ;;  %v1364_v27 = vld [vmem:[#allocation5 + $0x184] ss:$8 sps:$4 sm:$0xff]   ;;  %v1393_v28 = vld [vmem:[#allocation5 + $0x50] ss:$8 sps:$4 sm:$0xff]  }
  0x65   :  { %843 = vmatpush1.bf16.msra.mxu0 %v1345_v5  ;;  %801 = vmatprep.subr.bf16.mxu1 %v1373_v15  ;;  %v1366_v29 = vld [vmem:[#allocation5 + $0x180] ss:$8 sps:$4 sm:$0xff]   ;;  %v1397_v30 = vld [vmem:[#allocation5 + $0x64] ss:$8 sps:$4 sm:$0xff]   ;;  %v1370_v31 = vld [vmem:[#allocation5 + $0x194] ss:$8 sps:$4 sm:$0xff]  }
  0x66   :  { %844 = vmatprep.subr.bf16.mxu0 %v1346_v6  ;;  %v1769_v32 = vld [vmem:[#allocation2 + $0x8] sm:$0xff]  ;;  %v1399_v34 = vld [vmem:[#allocation5 + $0x60] ss:$8 sps:$4 sm:$0xff]   ;;  %v1403_v36 = vld [vmem:[#allocation5 + $0x74] ss:$8 sps:$4 sm:$0xff]   ;;  %s1678_s4 = smov [#allocation11]  }
  0x67   :  { %v1372_v33 = vld [vmem:[#allocation5 + $0x190] ss:$8 sps:$4 sm:$0xff]   ;;  %v1161_v35 = vcombine.high %v1769_v32, %v1769_v32  ;;  %v1376_v37 = vld [vmem:[#allocation5 + $0x1a4] ss:$8 sps:$4 sm:$0xff]   ;;  %v1378_v38 = vld [vmem:[#allocation5 + $0x1a0] ss:$8 sps:$4 sm:$0xff]   ;;  %v1160_v1 = vcombine.low %v1769_v32, %v1769_v32 }
  0x68   :  { %802 = vmatpush1.bf16.msra.mxu1 %v1375_v16  ;;  %v1405_v39 = vld [vmem:[#allocation5 + $0x70] ss:$8 sps:$4 sm:$0xff]   ;;  %v1409_v40 = vld [vmem:[#allocation5 + $0x84] ss:$8 sps:$4 sm:$0xff]   ;;  %v1382_v41 = vld [vmem:[#allocation5 + $0x1b4] ss:$8 sps:$4 sm:$0xff]  }
  0x69   :  { %845 = vmatpush1.bf16.msra.mxu0 %v1348_v7  ;;  %803 = vmatprep.subr.bf16.mxu1 %v1379_v18  ;;  %v1384_v42 = vld [vmem:[#allocation5 + $0x1b0] ss:$8 sps:$4 sm:$0xff]   ;;  %v1411_v43 = vld [vmem:[#allocation5 + $0x80] ss:$8 sps:$4 sm:$0xff]   ;;  %v1417_v44 = vld [vmem:[#allocation5 + $0x94] ss:$8 sps:$4 sm:$0xff]  }
  0x6a   :  { %846 = vmatprep.subr.bf16.mxu0 %v1349_v10  ;;  %870 = vmatprep.mubr.bf16.mxu0 %v1161_v35  ;;  %v1388_v45 = vld [vmem:[#allocation5 + $0x1c4] ss:$8 sps:$4 sm:$0xff]   ;;  %v1390_v46 = vld [vmem:[#allocation5 + $0x1c0] ss:$8 sps:$4 sm:$0xff]   ;;  %v1419_v47 = vld [vmem:[#allocation5 + $0x90] ss:$8 sps:$4 sm:$0xff]  }
  0x6b   :  { %v1423_v48 = vld [vmem:[#allocation5 + $0xa4] ss:$8 sps:$4 sm:$0xff]   ;;  %v1394_v49 = vld [vmem:[#allocation5 + $0x1d4] ss:$8 sps:$4 sm:$0xff]   ;;  %v1396_v50 = vld [vmem:[#allocation5 + $0x1d0] ss:$8 sps:$4 sm:$0xff]  }
  0x6c   :  { %804 = vmatpush1.bf16.msra.mxu1 %v1381_v20  ;;  %v1425_v51 = vld [vmem:[#allocation5 + $0xa0] ss:$8 sps:$4 sm:$0xff]   ;;  %v1429_v52 = vld [vmem:[#allocation5 + $0xb4] ss:$8 sps:$4 sm:$0xff]   ;;  %v1400_v53 = vld [vmem:[#allocation5 + $0x1e4] ss:$8 sps:$4 sm:$0xff]  }
  0x6d   :  { %847 = vmatpush1.bf16.msra.mxu0 %v1351_v13  ;;  %805 = vmatprep.subr.bf16.mxu1 %v1385_v22  ;;  %v1402_v54 = vld [vmem:[#allocation5 + $0x1e0] ss:$8 sps:$4 sm:$0xff]   ;;  %v1431_v56 = vld [vmem:[#allocation5 + $0xb0] ss:$8 sps:$4 sm:$0xff]   ;;  %v1435_v58 = vld [vmem:[#allocation5 + $0xc4] ss:$8 sps:$4 sm:$0xff]  }
  0x6e   :  { %848 = vmatprep.subr.bf16.mxu0 %v1352_v14  ;;  %v84_v55 = vld [vmem:[#allocation2] sm:$0xff]  ;;  %v1406_v59 = vld [vmem:[#allocation5 + $0x1f4] ss:$8 sps:$4 sm:$0xff]   ;;  %v1408_v60 = vld [vmem:[#allocation5 + $0x1f0] ss:$8 sps:$4 sm:$0xff]   ;;  %s1147_s28 = sshll.u32 %s1678_s4, 4  ;;  %s1148_s28 = int_to_ptr.vmem [resolvable:$true] %s1147_s28 }
  0x6f   :  { %v1159_v57 = vcombine.high %v84_v55, %v84_v55  ;;  %v1437_v61 = vld [vmem:[#allocation5 + $0xc0] ss:$8 sps:$4 sm:$0xff]   ;;  %v1441_v62 = vld [vmem:[#allocation5 + $0xd4] ss:$8 sps:$4 sm:$0xff]   ;;  %v1416_v63 = vld [vmem:[#allocation5 + $0x204] ss:$8 sps:$4 sm:$0xff]   ;;  %v1158_v14 = vcombine.low %v84_v55, %v84_v55  ;;  %p1643_p13 = scmp.lt.s32.totalorder %s1148_s28, %s1148_s28 }
  0x70   :  { %806 = vmatpush1.bf16.msra.mxu1 %v1387_v24  ;;  %v1414_v0 = vld [vmem:[#allocation5 + $0x200] ss:$8 sps:$4 sm:$0xff]   ;;  %v1443_v2 = vld [vmem:[#allocation5 + $0xd0] ss:$8 sps:$4 sm:$0xff]   ;;  %v1447_v3 = vld [vmem:[#allocation5 + $0xe4] ss:$8 sps:$4 sm:$0xff]  }
  0x71   :  { %849 = vmatpush1.bf16.msra.mxu0 %v1354_v17  ;;  %807 = vmatprep.subr.bf16.mxu1 %v1391_v26  ;;  %v1422_v4 = vld [vmem:[#allocation5 + $0x214] ss:$8 sps:$4 sm:$0xff]   ;;  %v1420_v5 = vld [vmem:[#allocation5 + $0x210] ss:$8 sps:$4 sm:$0xff]   ;;  %v1449_v6 = vld [vmem:[#allocation5 + $0xe0] ss:$8 sps:$4 sm:$0xff]  }
  0x72   :  { %850 = vmatprep.subr.bf16.mxu0 %v1355_v19  ;;  %829 = vmatprep.mubr.bf16.mxu1 %v1159_v57  ;;  %v1453_v7 = vld [vmem:[#allocation5 + $0xf4] ss:$8 sps:$4 sm:$0xff]   ;;  %v1428_v8 = vld [vmem:[#allocation5 + $0x224] ss:$8 sps:$4 sm:$0xff]   ;;  %v1426_v9 = vld [vmem:[#allocation5 + $0x220] ss:$8 sps:$4 sm:$0xff]  }
  0x73   :  { %v1455_v10 = vld [vmem:[#allocation5 + $0xf0] ss:$8 sps:$4 sm:$0xff]   ;;  %v1463_v11 = vld [vmem:[#allocation5 + $0x304] ss:$8 sps:$4 sm:$0xff]   ;;  %v1434_v12 = vld [vmem:[#allocation5 + $0x234] ss:$8 sps:$4 sm:$0xff]  }
  0x74   :  { %808 = vmatpush1.bf16.msra.mxu1 %v1393_v28  ;;  %v1432_v13 = vld [vmem:[#allocation5 + $0x230] ss:$8 sps:$4 sm:$0xff]   ;;  %v1461_v15 = vld [vmem:[#allocation5 + $0x300] ss:$8 sps:$4 sm:$0xff]   ;;  %v1469_v16 = vld [vmem:[#allocation5 + $0x314] ss:$8 sps:$4 sm:$0xff]  }
  0x75   :  { %851 = vmatpush1.bf16.msra.mxu0 %v1357_v21  ;;  %809 = vmatprep.subr.bf16.mxu1 %v1397_v30  ;;  %v1775_v17 = vld [vmem:[#allocation2 + $0x10] sm:$0xff]  ;;  %v1440_v18 = vld [vmem:[#allocation5 + $0x244] ss:$8 sps:$4 sm:$0xff]   ;;  %v1438_v21 = vld [vmem:[#allocation5 + $0x240] ss:$8 sps:$4 sm:$0xff]   ;;  %v1677_v24 = vmov 0  }
  0x76   :  { %852 = vmatprep.subr.bf16.mxu0 %v1358_v23  ;;  %v1467_v19 = vld [vmem:[#allocation5 + $0x310] ss:$8 sps:$4 sm:$0xff]   ;;  %v1163_v20 = vcombine.high %v1775_v17, %v1775_v17  ;;  %v1475_v22 = vld [vmem:[#allocation5 + $0x324] ss:$8 sps:$4 sm:$0xff]   ;;  %v1446_v23 = vld [vmem:[#allocation5 + $0x254] ss:$8 sps:$4 sm:$0xff]  }
  0x77   :  { %v1444_v26 = vld [vmem:[#allocation5 + $0x250] ss:$8 sps:$4 sm:$0xff]   ;;  %v1452_v28 = vld [vmem:[#allocation5 + $0x264] ss:$8 sps:$4 sm:$0xff]   ;;  %v1450_v30 = vld [vmem:[#allocation5 + $0x260] ss:$8 sps:$4 sm:$0xff]  }
  0x78   :  { %810 = vmatpush1.bf16.msra.mxu1 %v1399_v34  ;;  %v1458_v32 = vld [vmem:[#allocation5 + $0x274] ss:$8 sps:$4 sm:$0xff]   ;;  %v1456_v34 = vld [vmem:[#allocation5 + $0x270] ss:$8 sps:$4 sm:$0xff]   ;;  %v1500_v55 = vld [vmem:[#allocation5 + $0x2e0] ss:$8 sps:$4 sm:$0xff]  }
  0x79   :  { %853 = vmatpush1.bf16.msra.mxu0 %v1360_v25  ;;  %811 = vmatprep.subr.bf16.mxu1 %v1403_v36  ;;  %v1473_v25 = vld [vmem:[#allocation5 + $0x320] ss:$8 sps:$4 sm:$0xff]   ;;  %v1493_v35 = vld [vmem:[#allocation5 + $0x354] ss:$8 sps:$4 sm:$0xff]   ;;  %v1466_v36 = vld [vmem:[#allocation5 + $0x284] ss:$8 sps:$4 sm:$0xff]  }
  0x7a   :  { %854 = vmatprep.subr.bf16.mxu0 %v1364_v27  ;;  %v1481_v27 = vld [vmem:[#allocation5 + $0x334] ss:$8 sps:$4 sm:$0xff]   ;;  %v1506_v57 = vld [vmem:[#allocation5 + $0x2f0] ss:$8 sps:$4 sm:$0xff]   ;;  %s1638_s29 = scalar_lea.vmem %s1148_s28, 128 }
  0x7b   :  { %p1639_p12 = scmp.ne.s32.totalorder %s1148_s28, %s1638_s29  ;;  %p1644_p0 = scmp.lt.s32.totalorder %s1638_s29, %s1638_s29 }
  0x7c   :  { %812 = vmatpush1.bf16.msra.mxu1 %v1405_v39  ;;  %v1499_v39 = vld [vmem:[#allocation5 + $0x364] ss:$8 sps:$4 sm:$0xff]  }
  0x7d   :  { %855 = vmatpush1.bf16.msra.mxu0 %v1366_v29  ;;  %813 = vmatprep.subr.bf16.mxu1 %v1409_v40  ;;  %v1479_v29 = vld [vmem:[#allocation5 + $0x330] ss:$8 sps:$4 sm:$0xff]   ;;  %v1472_v40 = vld [vmem:[#allocation5 + $0x294] ss:$8 sps:$4 sm:$0xff]   ;;  %p1645_p1 = por %p1644_p0, %p1643_p13 }
  0x7e   :  { %856 = vmatprep.subr.bf16.mxu0 %v1370_v31  ;;  %v1487_v31 = vld [vmem:[#allocation5 + $0x344] ss:$8 sps:$4 sm:$0xff]  }
  0x7f   :  { %p1646_p2 = pnand %p1645_p1, %p1639_p12 }
  0x80   :  { %814 = vmatpush1.bf16.msra.mxu1 %v1411_v43  ;;  %v1505_v43 = vld [vmem:[#allocation5 + $0x374] ss:$8 sps:$4 sm:$0xff]  }
  0x81   :  { %857 = vmatpush1.bf16.msra.mxu0 %v1372_v33  ;;  %815 = vmatprep.subr.bf16.mxu1 %v1417_v44  ;;  %v1485_v33 = vld [vmem:[#allocation5 + $0x340] ss:$8 sps:$4 sm:$0xff]   ;;  %v1478_v44 = vld [vmem:[#allocation5 + $0x2a4] ss:$8 sps:$4 sm:$0xff]  }
  0x82   :  { %858 = vmatprep.subr.bf16.mxu0 %v1376_v37  ;;  %v1491_v37 = vld [vmem:[#allocation5 + $0x350] ss:$8 sps:$4 sm:$0xff]  }
  0x84   :  { %816 = vmatpush1.bf16.msra.mxu1 %v1419_v47  ;;  %v1484_v47 = vld [vmem:[#allocation5 + $0x2b4] ss:$8 sps:$4 sm:$0xff]  }
  0x85   :  { %859 = vmatpush1.bf16.msra.mxu0 %v1378_v38  ;;  %817 = vmatprep.subr.bf16.mxu1 %v1423_v48  ;;  %v1464_v38 = vld [vmem:[#allocation5 + $0x280] ss:$8 sps:$4 sm:$0xff]   ;;  %v1511_v48 = vld [vmem:[#allocation2 + $0x18] ss:$0 sps:$4 sm:$0xff]  }
  0x86   :  { %860 = vmatprep.subr.bf16.mxu0 %v1382_v41  ;;  %v1497_v41 = vld [vmem:[#allocation5 + $0x360] ss:$8 sps:$4 sm:$0xff]  }
  0x88   :  { %818 = vmatpush1.bf16.msra.mxu1 %v1425_v51  ;;  %v1488_v51 = vld [vmem:[#allocation5 + $0x2c0] ss:$8 sps:$4 sm:$0xff]  }
  0x89   :  { %861 = vmatpush1.bf16.msra.mxu0 %v1384_v42  ;;  %819 = vmatprep.subr.bf16.mxu1 %v1429_v52  ;;  %v1470_v42 = vld [vmem:[#allocation5 + $0x290] ss:$8 sps:$4 sm:$0xff]   ;;  %v1496_v52 = vld [vmem:[#allocation5 + $0x2d4] ss:$8 sps:$4 sm:$0xff]  }
  0x8a   :  { %862 = vmatprep.subr.bf16.mxu0 %v1388_v45  ;;  %v1503_v45 = vld [vmem:[#allocation5 + $0x370] ss:$8 sps:$4 sm:$0xff]  }
  0x8c   :  { %820 = vmatpush1.bf16.msra.mxu1 %v1431_v56  ;;  %v1508_v56 = vld [vmem:[#allocation5 + $0x2f4] ss:$8 sps:$4 sm:$0xff]  }
  0x8d   :  { %863 = vmatpush1.bf16.msra.mxu0 %v1390_v46  ;;  %821 = vmatprep.subr.bf16.mxu1 %v1435_v58  ;;  %v1476_v46 = vld [vmem:[#allocation5 + $0x2a0] ss:$8 sps:$4 sm:$0xff]   ;;  %v1162_v58 = vcombine.low %v1775_v17, %v1775_v17 }
  0x8e   :  { %864 = vmatprep.subr.bf16.mxu0 %v1394_v49  ;;  %v1482_v49 = vld [vmem:[#allocation5 + $0x2b0] ss:$8 sps:$4 sm:$0xff]  }
  0x90   :  { %822 = vmatpush1.bf16.msra.mxu1 %v1437_v61  ;;  %v1514_v61 = vld [vmem:[#allocation8 + $0x48] sm:$0xff]  }
  0x91   :  { %865 = vmatpush1.bf16.msra.mxu0 %v1396_v50  ;;  %823 = vmatprep.subr.bf16.mxu1 %v1441_v62  ;;  %v1490_v50 = vld [vmem:[#allocation5 + $0x2c4] ss:$8 sps:$4 sm:$0xff]  }
  0x92   :  { %866 = vmatprep.subr.bf16.mxu0 %v1400_v53  ;;  %v1494_v53 = vld [vmem:[#allocation5 + $0x2d0] ss:$8 sps:$4 sm:$0xff]  }
  0x93   :  { %v1515_v62 = vld [vmem:[#allocation8 + $0x8] sm:$0xff]  }
  0x94   :  { %824 = vmatpush1.bf16.msra.mxu1 %v1443_v2  ;;  %v1519_v2 = vld [vmem:[#allocation8 + $0x18] sm:$0xff]  }
  0x95   :  { %867 = vmatpush1.bf16.msra.mxu0 %v1402_v54  ;;  %825 = vmatprep.subr.bf16.mxu1 %v1447_v3  ;;  %v1502_v54 = vld [vmem:[#allocation5 + $0x2e4] ss:$8 sps:$4 sm:$0xff]  }
  0x96   :  { %868 = vmatprep.subr.bf16.mxu0 %v1406_v59  ;;  %v1512_v59 = vld [vmem:[#allocation8 + $0x40] sm:$0xff]  }
  0x97   :  { %v1520_v3 = vld [vmem:[#allocation8 + $0x60] sm:$0xff]  }
  0x98   :  { %826 = vmatpush1.bf16.msra.mxu1 %v1449_v6  ;;  %v1523_v6 = vld [vmem:[#allocation8 + $0x28] sm:$0xff]  }
  0x99   :  { %869 = vmatpush1.bf16.msra.mxu0 %v1408_v60  ;;  %827 = vmatprep.subr.bf16.mxu1 %v1453_v7  ;;  %v1513_v60 = vld [vmem:[#allocation8] sm:$0xff]   ;;  %v1524_v7 = vld [vmem:[#allocation8 + $0x70] sm:$0xff]  }
  0x9a   :  { %879 = vmatprep.subr.bf16.mxu0 %v1416_v63  ;;  %v1516_v63 = vld [vmem:[#allocation8 + $0x50] sm:$0xff]  }
  0x9c   :  { %871 = vmatmul.mubr.bf16.vlgmr.msra.gmra.mrb[0].mxu0 %v1160_v1  ;;  %828 = vmatpush1.bf16.msra.mxu1 %v1455_v10  ;;  %v1518_v1 = vld [vmem:[#allocation8 + $0x58] sm:$0xff]  }
  0x9d   :  { %880 = vmatpush1.bf16.msra.mxu0 %v1414_v0  ;;  %920 = vmatprep.subr.bf16.mxu1 %v1463_v11  ;;  %v1517_v0 = vld [vmem:[#allocation8 + $0x10] sm:$0xff]   ;;  %v1527_v10 = vld [vmem:[#allocation8 + $0x38] sm:$0xff]  }
  0x9e   :  { %881 = vmatprep.subr.bf16.mxu0 %v1422_v4  ;;  %911 = vmatprep.mubr.bf16.mxu0 %v1163_v20  ;;  %v1521_v4 = vld [vmem:[#allocation8 + $0x20] sm:$0xff]  }
  0x9f   :  { %830 = vmatmul.mubr.bf16.vlgmr.msra.gmra.mrb[0].mxu1 %v1158_v14 }
  0xa0   :  { %921 = vmatpush1.bf16.msra.mxu1 %v1461_v15  ;;  %952 = vmatprep.mubr.bf16.mxu1 %v1677_v24 }
  0xa1   :  { %882 = vmatpush1.bf16.msra.mxu0 %v1420_v5  ;;  %922 = vmatprep.subr.bf16.mxu1 %v1469_v16  ;;  %v1522_v5 = vld [vmem:[#allocation8 + $0x68] sm:$0xff]  }
  0xa2   :  { %883 = vmatprep.subr.bf16.mxu0 %v1428_v8  ;;  %v1525_v8 = vld [vmem:[#allocation8 + $0x30] sm:$0xff]  }
  0xa4   :  { %923 = vmatpush1.bf16.msra.mxu1 %v1467_v19  ;;  %v202_v19 = vlaneseq }
  0xa5   :  { %884 = vmatpush1.bf16.msra.mxu0 %v1426_v9  ;;  %924 = vmatprep.subr.bf16.mxu1 %v1475_v22  ;;  %v1526_v9 = vld [vmem:[#allocation8 + $0x78] sm:$0xff]  }
  0xa6   :  { %885 = vmatprep.subr.bf16.mxu0 %v1434_v12  ;;  %v203_v20 = vshrl.u32 %v202_v19, 7  ;;  %v200_v22 = vld [vmem:[#allocation7] sm:$0x3] }
  0xa8   :  { %925 = vmatpush1.bf16.msra.mxu1 %v1473_v25 }
  0xa9   :  { %886 = vmatpush1.bf16.msra.mxu0 %v1432_v13  ;;  %926 = vmatprep.subr.bf16.mxu1 %v1481_v27 }
  0xaa   :  { %887 = vmatprep.subr.bf16.mxu0 %v1440_v18 }
  0xac   :  { %927 = vmatpush1.bf16.msra.mxu1 %v1479_v29 }
  0xad   :  { %888 = vmatpush1.bf16.msra.mxu0 %v1438_v21  ;;  %928 = vmatprep.subr.bf16.mxu1 %v1487_v31  ;;  %v204_v21 = vsub.s32 0, %v203_v20 }
  0xae   :  { %889 = vmatprep.subr.bf16.mxu0 %v1446_v23  ;;  %v208_v23 = vsub.s32 1, %v203_v20 }
  0xaf   :  { %v205_v24 = vrot.slane %v200_v22, %v204_v21 }
  0xb0   :  { %929 = vmatpush1.bf16.msra.mxu1 %v1485_v33  ;;  %v209_v25 = vrot.slane %v200_v22, %v208_v23 }
  0xb1   :  { %890 = vmatpush1.bf16.msra.mxu0 %v1444_v26  ;;  %930 = vmatprep.subr.bf16.mxu1 %v1493_v35 }
  0xb2   :  { %891 = vmatprep.subr.bf16.mxu0 %v1452_v28 }
  0xb4   :  { %931 = vmatpush1.bf16.msra.mxu1 %v1491_v37 }
  0xb5   :  { %892 = vmatpush1.bf16.msra.mxu0 %v1450_v30  ;;  %932 = vmatprep.subr.bf16.mxu1 %v1499_v39 }
  0xb6   :  { %893 = vmatprep.subr.bf16.mxu0 %v1458_v32 }
  0xb8   :  { %933 = vmatpush1.bf16.msra.mxu1 %v1497_v41  ;;  %v1277_v41 = vld [vmem:[#allocation10] ss:$0 sm:$0xff] }
  0xb9   :  { %894 = vmatpush1.bf16.msra.mxu0 %v1456_v34  ;;  %934 = vmatprep.subr.bf16.mxu1 %v1505_v43 }
  0xba   :  { %895 = vmatprep.subr.bf16.mxu0 %v1466_v36 }
  0xbc   :  { %935 = vmatpush1.bf16.msra.mxu1 %v1503_v45 }
  0xbd   :  { %896 = vmatpush1.bf16.msra.mxu0 %v1464_v38  ;;  %1294 = vmatprep.subr.bf16.mxu1 %v1512_v59 }
  0xbe   :  { %897 = vmatprep.subr.bf16.mxu0 %v1472_v40 }
  0xbf   :  { %953 = vmatmul.mubr.bf16.vlgmr.msra.gmra.mrb[4].mxu1 %v1511_v48 }
  0xc0   :  { %1295 = vmatpush3.bf16.msra.mxu1 %v1513_v60 }
  0xc1   :  { %898 = vmatpush1.bf16.msra.mxu0 %v1470_v42  ;;  %1296 = vmatprep.subr.bf16.mxu1 %v1514_v61 }
  0xc2   :  { %899 = vmatprep.subr.bf16.mxu0 %v1478_v44 }
  0xc4   :  { %1297 = vmatpush3.bf16.msra.mxu1 %v1515_v62 }
  0xc5   :  { %900 = vmatpush1.bf16.msra.mxu0 %v1476_v46  ;;  %1298 = vmatprep.subr.bf16.mxu1 %v1516_v63 }
  0xc6   :  { %901 = vmatprep.subr.bf16.mxu0 %v1484_v47 }
  0xc8   :  { %1299 = vmatpush3.bf16.msra.mxu1 %v1517_v0 }
  0xc9   :  { %902 = vmatpush1.bf16.msra.mxu0 %v1482_v49  ;;  %1300 = vmatprep.subr.bf16.mxu1 %v1518_v1 }
  0xca   :  { %903 = vmatprep.subr.bf16.mxu0 %v1490_v50 }
  0xcc   :  { %1301 = vmatpush3.bf16.msra.mxu1 %v1519_v2 }
  0xcd   :  { %904 = vmatpush1.bf16.msra.mxu0 %v1488_v51  ;;  %1302 = vmatprep.subr.bf16.mxu1 %v1520_v3 }
  0xce   :  { %905 = vmatprep.subr.bf16.mxu0 %v1496_v52 }
  0xd0   :  { %1303 = vmatpush3.bf16.msra.mxu1 %v1521_v4 }
  0xd1   :  { %906 = vmatpush1.bf16.msra.mxu0 %v1494_v53  ;;  %1304 = vmatprep.subr.bf16.mxu1 %v1522_v5 }
  0xd2   :  { %907 = vmatprep.subr.bf16.mxu0 %v1502_v54 }
  0xd4   :  { %1305 = vmatpush3.bf16.msra.mxu1 %v1523_v6 }
  0xd5   :  { %908 = vmatpush1.bf16.msra.mxu0 %v1500_v55  ;;  %1306 = vmatprep.subr.bf16.mxu1 %v1524_v7 }
  0xd6   :  { %909 = vmatprep.subr.bf16.mxu0 %v1508_v56 }
  0xd8   :  { %1307 = vmatpush3.bf16.msra.mxu1 %v1525_v8 }
  0xd9   :  { %910 = vmatpush1.bf16.msra.mxu0 %v1506_v57  ;;  %1308 = vmatprep.subr.bf16.mxu1 %v1526_v9 }
  0xdc   :  { %912 = vmatmul.mubr.bf16.vlgmr.msra.gmra.mrb[0].mxu0 %v1162_v58  ;;  %1309 = vmatpush3.bf16.msra.mxu1 %v1527_v10 }
 0x172   :  { %v831_v11 = vpop.f32.mrb[0].mxu1 }
 0x173   :  { %v833_v12 = vpop.f32.mrb[1].mxu1  ;;  %v832_v26 = vadd.f32 %v831_v11, %v205_v24 }
 0x174   :  { %v835_v13 = vpop.f32.mrb[2].mxu1  ;;  %v834_v27 = vadd.f32 %v833_v12, %v209_v25 }
 0x175   :  { %v836_v14 = vpop.f32.mrb[3].mxu1 }
 0x192   :  { %v954_v15 = vpop.f32.mrb[4].mxu1 }
 0x193   :  { %v956_v16 = vpop.f32.mrb[5].mxu1 }
 0x194   :  { %v958_v17 = vpop.f32.mrb[6].mxu1 }
 0x195   :  { %v959_v18 = vpop.f32.mrb[7].mxu1 }
 0x1af   :  { %v913_v28 = vpop.f32.mrb[0].mxu0 }
 0x1b0   :  { %v1317_v29 = vadd.f32 %v913_v28, %v832_v26  ;;  %v915_v30 = vpop.f32.mrb[1].mxu0 }
 0x1b1   :  { %v1320_v31 = vadd.f32 %v915_v30, %v834_v27  ;;  %v917_v32 = vpop.f32.mrb[2].mxu0 }
 0x1b2   :  { %v1318_v33 = vadd.f32 %v1317_v29, %v954_v15  ;;  %v918_v34 = vpop.f32.mrb[3].mxu0 }
 0x1b3   :  { %v1321_v35 = vadd.f32 %v1320_v31, %v956_v16 }
 0x1b4   :  { %v961_v36 = vmax.f32 %v1318_v33, 0.0 }
 0x1b5   :  { %v962_v37 = vmax.f32 %v1321_v35, 0.0 }
 0x1b6   :  { %v963_v39 = vpack.c.bf16 %v961_v36, %v961_v36 }
 0x1b7   :  { %v964_v38 = vpack.c.bf16 %v962_v37, %v962_v37 }
 0x1b9   :  { %1132 = vmatprep.mubr.bf16.mxu1 %v964_v38 }
 0x1ba   :  { %1133 = vmatmul.mubr.bf16.vlgmr.msra.gmra.mrb[8].mxu1 %v963_v39 }
 0x28d   :  { %v1310_v40 = vpop.f32.mrb[8].mxu1 }
 0x28e   :  { %v1311_v42 = vpop.f32.mrb[9].mxu1 }
 0x28f   :  { %v1312_v43 = vadd.f32 %v1311_v42, %v1310_v40  ;;  %v1313_v44 = vpop.f32.mrb[10].mxu1 }
 0x290   :  { %v1314_v45 = vpop.f32.mrb[11].mxu1 }
 0x291   :  { %v1135_v46 = vadd.f32 %v1312_v43, %v1277_v41 }
 0x293   :  { %1140 = vst [vmem:[#allocation11] sm:$0xff] %v1135_v46 }
 0x294   :  { %1649 = shalt.err (!%p1646_p2)
}
 0x295   :  { %s1650_s6 = scalar_lea.hbm %s1798_s5, 128 }
 0x296   :  { %p1651_p3 = scmp.ne.s32.totalorder %s1798_s5, %s1650_s6  ;;  %p1654_p4 = scmp.lt.u32.totalorder %s1650_s6, %s1798_s5 }
 0x298   :  { %p1656_p5 = pnand %p1654_p4, %p1651_p3 }
 0x29a   :  { %1659 = shalt.err (!%p1656_p5)
}
 0x29b   :  { %1150 = dma.vmem_to_hbm [thread:$0]  %s1148_s28, 128, %s1798_s5, [#allocation4]  }
 0x29c   :  { %1666 = dma.done.wait [#allocation4], 128  }
 0x29d   :  { %1667 = vsyncadd [#allocation4], 4294967168 }
 0x29e   :  { %1154 = vsyncpa [#allocation3], 1 }
 0x29f   :  { %1155 = vsyncpa [#allocation6], 1 }
 0x2a0   :  { %1156 = vsyncpa [#allocation9], 1 }
 0x2a1   :  { %1157 = vsyncpa [#allocation4], 1 }

</bundles_post_ra>
